<compile_context>
chip_gen: v6e
topology: v6e:2x2x1
jax: 0.10.0
libtpu: 0.0.40
codegen_flags: <defaults>
</compile_context>

<pallas_src>
import functools

import jax
import jax.numpy as jnp
from jax.experimental import pallas as pl
from jax.experimental.pallas import tpu as pltpu


def _round_up(x, m):
    return ((x + m - 1) // m) * m


def _cdiv(a, b):
    return -(-a // b)


def _sublane_align(dtype):
    """Rows per vreg sublane group: 8 for 4-byte, 16 for 2-byte, 32 for 1-byte."""
    itemsize = jnp.dtype(dtype).itemsize
    return max(8, 32 // max(itemsize, 1))


def _tpu_params():
    """(vmem_limit_bytes, input-buffer budget, tensorcores-per-chip)."""
    vmem_cap = 128 << 20
    cores = 1
    try:
        info = pltpu.get_tpu_info()
        vmem_cap = int(getattr(info, "vmem_capacity_bytes", vmem_cap) or vmem_cap)
        for attr in ("num_cores", "tensorcore_count", "num_tensorcores",
                     "cores_per_chip"):
            v = getattr(info, attr, None)
            if v:
                cores = int(v)
                break
    except Exception:  # pragma: no cover - conservative fallback off-TPU/old jax
        pass
    # Explicit scoped-VMEM limit: ~2/3 of physical, clamped to [32, 64] MiB.
    vmem_limit = min(64 << 20, max(32 << 20, (vmem_cap * 2) // 3))
    # Budget for the pipelined input windows; leave headroom for compiler
    # internal scratch under the limit.
    budget = max(8 << 20, vmem_limit - (16 << 20))
    return vmem_limit, budget, max(1, min(cores, 2))


def _choose_block_rows(batch, feat, itemsize, align, budget_bytes):
    """Rows per tile: 3 input streams x 2 pipeline buffers under the budget."""
    bytes_per_row = 3 * 2 * feat * itemsize
    tb = budget_bytes // max(bytes_per_row, 1)
    tb = min(tb, 4096)                       # per-step overhead amortized long before this
    tb = min(tb, _round_up(batch, align))    # don't exceed the (padded) batch
    tb = max(align, (tb // align) * align)   # dtype-correct sublane alignment
    return tb


def _triplet_loss_kernel(a_ref, p_ref, n_ref, o_ref, *, margin, batch_size,
                         block_rows, tiles_per_core, needs_mask):
    c = pl.program_id(0)   # tensorcore split ("parallel")
    i = pl.program_id(1)   # batch tiles for this core ("arbitrary")

    # Zero this core's resident partial-sum block on its first tile.
    @pl.when(i == 0)
    def _():
        o_ref[...] = jnp.zeros_like(o_ref)

    a = a_ref[...].astype(jnp.float32)
    p = p_ref[...].astype(jnp.float32)
    n = n_ref[...].astype(jnp.float32)

    dp = a - p
    dn = a - n

    # Per-sample L2 distance over the feature axis (dim=1 == lanes).
    pos_dist = jnp.sqrt(jnp.sum(dp * dp, axis=1, keepdims=True))  # (TB, 1)
    neg_dist = jnp.sqrt(jnp.sum(dn * dn, axis=1, keepdims=True))  # (TB, 1)

    hinge = jnp.maximum(pos_dist - neg_dist + margin, 0.0)        # (TB, 1)

    if needs_mask:
        # Mask padded / out-of-range rows using the *unclamped* global row
        # index (the input index_map clamps the block, the mask zeroes it).
        g = c * tiles_per_core + i
        row = g * block_rows + jax.lax.broadcasted_iota(jnp.int32, hinge.shape, 0)
        hinge = jnp.where(row < batch_size, hinge, 0.0)

    # Accumulate the per-tile hinge sum directly into the resident output
    # block (scalar broadcast over the (8, 128) tile).
    o_ref[...] = o_ref[...] + jnp.sum(hinge)


def triplet_loss(anchor, positive, negative, margin=1.0, block_rows=None,
                 num_cores=None):
    assert anchor.shape == positive.shape == negative.shape
    assert anchor.ndim == 2, "expected (batch, features) embeddings"
    B, D = anchor.shape

    vmem_limit, budget, detected_cores = _tpu_params()
    align = _sublane_align(anchor.dtype)

    if block_rows is None:
        tb = _choose_block_rows(B, D, anchor.dtype.itemsize, align, budget)
    else:
        tb = min(int(block_rows), _round_up(B, align))
        tb = max(align, (tb // align) * align)

    total_tiles = _cdiv(B, tb)
    if num_cores is None:
        C = max(1, min(detected_cores, total_tiles))
    else:
        C = max(1, int(num_cores))
    tiles_per_core = _cdiv(total_tiles, C)
    grid = (C, tiles_per_core)
    needs_mask = (C * tiles_per_core * tb) != B

    def in_map(c, i):
        g = c * tiles_per_core + i
        # Clamp so a core's trailing (fully-masked) tiles never index OOB.
        return (jnp.minimum(g, total_tiles - 1), 0)

    in_spec = pl.BlockSpec((tb, D), in_map)
    out_spec = pl.BlockSpec((8, 128), lambda c, i: (c, 0))

    kernel = functools.partial(
        _triplet_loss_kernel,
        margin=float(margin),
        batch_size=B,
        block_rows=tb,
        tiles_per_core=tiles_per_core,
        needs_mask=needs_mask,
    )

    out = pl.pallas_call(
        kernel,
        out_shape=jax.ShapeDtypeStruct((C * 8, 128), jnp.float32),
        grid_spec=pltpu.PrefetchScalarGridSpec(
            num_scalar_prefetch=0,
            grid=grid,
            in_specs=[in_spec, in_spec, in_spec],
            out_specs=out_spec,
        ),
        compiler_params=pltpu.CompilerParams(
            # Core-split axis may run on both TCs; the batch-tile axis carries
            # the resident per-core accumulator.
            dimension_semantics=("parallel", "arbitrary"),
            vmem_limit_bytes=vmem_limit,
        ),
    )(anchor, positive, negative)

    partials = out.reshape(C, 8, 128)[:, 0, 0]   # one partial sum per core
    return jnp.sum(partials) / B


def _reference_triplet_loss(anchor, positive, negative, margin=1.0):
    a = anchor.astype(jnp.float32)
    p = positive.astype(jnp.float32)
    n = negative.astype(jnp.float32)
    pos_dist = jnp.linalg.norm(a - p, axis=1)
    neg_dist = jnp.linalg.norm(a - n, axis=1)
    return jnp.mean(jnp.maximum(pos_dist - neg_dist + margin, 0.0))


if __name__ == "__main__":
    key = jax.random.PRNGKey(0)
    k_a, k_p, k_n = jax.random.split(key, 3)

    # Case 1: batch not a multiple of the tile -> multi-step accumulation +
    # remainder masking (B=20, TB=8 -> 3 grid steps on one core).
    B, D = 20, 32
    anchor = jax.random.normal(k_a, (B, D), dtype=jnp.float32)
    positive = jax.random.normal(k_p, (B, D), dtype=jnp.float32)
    negative = jax.random.normal(k_n, (B, D), dtype=jnp.float32)

    loss = triplet_loss(anchor, positive, negative, margin=1.0,
                        block_rows=8, num_cores=1)
    loss = jax.block_until_ready(loss)
    ref = _reference_triplet_loss(anchor, positive, negative, margin=1.0)
    assert jnp.allclose(loss, ref, atol=1e-5, rtol=1e-5), (loss, ref)

    # Case 2: lane-aligned features, automatic tile / core selection.
    B2, D2 = 16, 128
    a2 = jax.random.normal(k_a, (B2, D2), dtype=jnp.float32)
    p2 = jax.random.normal(k_p, (B2, D2), dtype=jnp.float32)
    n2 = jax.random.normal(k_n, (B2, D2), dtype=jnp.float32)

    loss2 = triplet_loss(a2, p2, n2, margin=0.5)
    loss2 = jax.block_until_ready(loss2)
    ref2 = _reference_triplet_loss(a2, p2, n2, margin=0.5)
    assert jnp.allclose(loss2, ref2, atol=1e-5, rtol=1e-5), (loss2, ref2)

    # Case 3: bf16 inputs (16-row sublane alignment) + forced 2-way core
    # split, including a clamped fully-masked tail tile on core 1.
    B3, D3 = 48, 256
    a3 = jax.random.normal(k_a, (B3, D3), dtype=jnp.bfloat16)
    p3 = jax.random.normal(k_p, (B3, D3), dtype=jnp.bfloat16)
    n3 = jax.random.normal(k_n, (B3, D3), dtype=jnp.bfloat16)

    loss3 = triplet_loss(a3, p3, n3, margin=1.0, block_rows=16, num_cores=2)
    loss3 = jax.block_until_ready(loss3)
    ref3 = _reference_triplet_loss(a3, p3, n3, margin=1.0)
    assert jnp.allclose(loss3, ref3, atol=1e-4, rtol=1e-4), (loss3, ref3)

    print("KERNEL_OK")
</pallas_src>

<mosaic_0001>
module attributes {stable_mosaic.version = 11 : i64} {
  func.func @_triplet_loss_kernel(%arg0: i32, %arg1: i32, %arg2: memref<8x32xf32, #tpu.memory_space<vmem>>, %arg3: memref<8x32xf32, #tpu.memory_space<vmem>>, %arg4: memref<8x32xf32, #tpu.memory_space<vmem>>, %arg5: memref<8x128xf32, #tpu.memory_space<vmem>>) attributes {dimension_semantics = [#tpu.dimension_semantics<parallel>, #tpu.dimension_semantics<arbitrary>], iteration_bounds = array<i64: 1, 3>, scalar_prefetch = 0 : i64, scratch_operands = 0 : i64, tpu.core_type = #tpu.core_type<tc>, window_params = [{transform_indices = @transform_0, window_bounds = array<i64: 8, 32>}, {transform_indices = @transform_1, window_bounds = array<i64: 8, 32>}, {transform_indices = @transform_2, window_bounds = array<i64: 8, 32>}, {transform_indices = @transform_3, window_bounds = array<i64: 8, 128>}]} {
    %c0_i32 = arith.constant 0 : i32
    %0 = arith.cmpi eq, %arg1, %c0_i32 : i32
    %1 = arith.extui %0 : i1 to i32
    %c0_i32_0 = arith.constant 0 : i32
    %2 = arith.cmpi ne, %1, %c0_i32_0 : i32
    scf.if %2 {
      %cst_15 = arith.constant 0.000000e+00 : f32
      %39 = vector.broadcast %cst_15 : f32 to vector<8x128xf32>
      %c0_16 = arith.constant 0 : index
      %c0_17 = arith.constant 0 : index
      %40 = vector.load %arg5[%c0_16, %c0_17] : memref<8x128xf32, #tpu.memory_space<vmem>>, vector<8x128xf32>
      tpu.vector_store %arg5[%c0_16, %c0_17], %39 {strides = array<i32>} : memref<8x128xf32, #tpu.memory_space<vmem>>, vector<8x128xf32>,
    } else {
    }
    %c0 = arith.constant 0 : index
    %c0_1 = arith.constant 0 : index
    %3 = vector.load %arg2[%c0, %c0_1] : memref<8x32xf32, #tpu.memory_space<vmem>>, vector<8x32xf32>
    %c0_2 = arith.constant 0 : index
    %c0_3 = arith.constant 0 : index
    %4 = vector.load %arg3[%c0_2, %c0_3] : memref<8x32xf32, #tpu.memory_space<vmem>>, vector<8x32xf32>
    %c0_4 = arith.constant 0 : index
    %c0_5 = arith.constant 0 : index
    %5 = vector.load %arg4[%c0_4, %c0_5] : memref<8x32xf32, #tpu.memory_space<vmem>>, vector<8x32xf32>
    %6 = arith.subf %3, %4 : vector<8x32xf32>
    %7 = arith.subf %3, %5 : vector<8x32xf32>
    %8 = arith.mulf %6, %6 : vector<8x32xf32>
    %cst = arith.constant dense<0.000000e+00> : vector<8xf32>
    %9 = vector.multi_reduction <add>, %8, %cst [1] : vector<8x32xf32> to vector<8xf32>
    %10 = vector.shape_cast %9 : vector<8xf32> to vector<8x1xf32>
    %11 = math.sqrt %10 : vector<8x1xf32>
    %12 = arith.mulf %7, %7 : vector<8x32xf32>
    %cst_6 = arith.constant dense<0.000000e+00> : vector<8xf32>
    %13 = vector.multi_reduction <add>, %12, %cst_6 [1] : vector<8x32xf32> to vector<8xf32>
    %14 = vector.shape_cast %13 : vector<8xf32> to vector<8x1xf32>
    %15 = math.sqrt %14 : vector<8x1xf32>
    %16 = arith.subf %11, %15 : vector<8x1xf32>
    %cst_7 = arith.constant 1.000000e+00 : f32
    %17 = vector.broadcast %cst_7 : f32 to vector<8x1xf32>
    %18 = arith.addf %16, %17 : vector<8x1xf32>
    %cst_8 = arith.constant 0.000000e+00 : f32
    %19 = vector.broadcast %cst_8 : f32 to vector<8x1xf32>
    %20 = arith.maximumf %18, %19 : vector<8x1xf32>
    %c3_i32 = arith.constant 3 : i32
    %21 = arith.muli %arg0, %c3_i32 : i32
    %22 = arith.addi %21, %arg1 : i32
    %c8_i32 = arith.constant 8 : i32
    %23 = arith.muli %22, %c8_i32 : i32
    %24 = tpu.iota {dimensions = array<i32: 0>} : vector<8x1xi32>
    %25 = vector.broadcast %23 : i32 to vector<8x1xi32>
    %26 = arith.addi %25, %24 : vector<8x1xi32>
    %c20_i32 = arith.constant 20 : i32
    %27 = vector.broadcast %c20_i32 : i32 to vector<8x1xi32>
    %28 = arith.cmpi slt, %26, %27 : vector<8x1xi32>
    %cst_9 = arith.constant 0.000000e+00 : f32
    %29 = vector.broadcast %cst_9 : f32 to vector<8x1xf32>
    %30 = arith.select %28, %20, %29 : vector<8x1xi1>, vector<8x1xf32>
    %c0_10 = arith.constant 0 : index
    %c0_11 = arith.constant 0 : index
    %31 = vector.load %arg5[%c0_10, %c0_11] : memref<8x128xf32, #tpu.memory_space<vmem>>, vector<8x128xf32>
    %32 = vector.shape_cast %30 : vector<8x1xf32> to vector<1x8x1xf32>
    %cst_12 = arith.constant dense<0.000000e+00> : vector<1xf32>
    %33 = vector.multi_reduction <add>, %32, %cst_12 [1, 2] : vector<1x8x1xf32> to vector<1xf32>
    %34 = vector.shape_cast %33 : vector<1xf32> to vector<1x1x1xf32>
    %35 = vector.extract %34[0, 0, 0] : f32 from vector<1x1x1xf32>
    %36 = vector.broadcast %35 : f32 to vector<8x128xf32>
    %37 = arith.addf %31, %36 : vector<8x128xf32>
    %c0_13 = arith.constant 0 : index
    %c0_14 = arith.constant 0 : index
    %38 = vector.load %arg5[%c0_13, %c0_14] : memref<8x128xf32, #tpu.memory_space<vmem>>, vector<8x128xf32>
    tpu.vector_store %arg5[%c0_13, %c0_14], %37 {strides = array<i32>} : memref<8x128xf32, #tpu.memory_space<vmem>>, vector<8x128xf32>,
    return
  }
  func.func @transform_0(%arg0: i32, %arg1: i32) -> (i32, i32) {
    %c3_i32 = arith.constant 3 : i32
    %0 = arith.muli %arg0, %c3_i32 : i32
    %1 = arith.addi %0, %arg1 : i32
    %c2_i32 = arith.constant 2 : i32
    %2 = arith.minsi %1, %c2_i32 : i32
    %c0_i32 = arith.constant 0 : i32
    %c0_i32_0 = arith.constant 0 : i32
    return %2, %c0_i32 : i32, i32
  }
  func.func @transform_1(%arg0: i32, %arg1: i32) -> (i32, i32) {
    %c3_i32 = arith.constant 3 : i32
    %0 = arith.muli %arg0, %c3_i32 : i32
    %1 = arith.addi %0, %arg1 : i32
    %c2_i32 = arith.constant 2 : i32
    %2 = arith.minsi %1, %c2_i32 : i32
    %c0_i32 = arith.constant 0 : i32
    %c0_i32_0 = arith.constant 0 : i32
    return %2, %c0_i32 : i32, i32
  }
  func.func @transform_2(%arg0: i32, %arg1: i32) -> (i32, i32) {
    %c3_i32 = arith.constant 3 : i32
    %0 = arith.muli %arg0, %c3_i32 : i32
    %1 = arith.addi %0, %arg1 : i32
    %c2_i32 = arith.constant 2 : i32
    %2 = arith.minsi %1, %c2_i32 : i32
    %c0_i32 = arith.constant 0 : i32
    %c0_i32_0 = arith.constant 0 : i32
    return %2, %c0_i32 : i32, i32
  }
  func.func @transform_3(%arg0: i32, %arg1: i32) -> (i32, i32) {
    %c0_i32 = arith.constant 0 : i32
    %c0_i32_0 = arith.constant 0 : i32
    return %arg0, %c0_i32 : i32, i32
  }
}

</mosaic_0001>

<bundles_post_ra>
// kernel: tpu_custom_call.1
= control target key start
LH: loop header
LB: loop body
LE: loop exit
PB: predicated region body
PF: predicated region fallthrough
CT: control target
= control target key end

     0   :  { %8 = vsyncpa [#allocation3], 0  ;;  %s928_s0 = inlined_call_operand.hbm [shape: f32[20,32], index: 0, kind: input, shape index: {}]   ;;  %s929_s1 = inlined_call_operand.hbm [shape: f32[20,32], index: 1, kind: input, shape index: {}]   ;;  %s930_s2 = inlined_call_operand.hbm [shape: f32[20,32], index: 2, kind: input, shape index: {}]   ;;  %s931_s3 = inlined_call_operand.hbm [shape: f32[8,128], index: 3, kind: output, shape index: {}]  }
   0x1   :  { %10 = vsyncpa [#allocation3 + $0x1], 0 }
   0x2   :  { %11 = vsyncpa [#allocation6], 0 }
   0x3   :  { %13 = vsyncpa [#allocation6 + $0x1], 0 }
   0x4   :  { %14 = vsyncpa [#allocation4], 0  ;;  %s774_s12 = smov 0   ;;  %s776_s13 = smov 0  }
   0x5   :  { %s778_s14 = smov 0   ;;  %s780_s15 = smov 0  }
   0x6   :  { %s782_s16 = smov 0   ;;  %s784_s17 = smov 0  }
   0x7 LB: > { %s803_s18 = sadd.s32 4294967295, %s747_s17   ;;  %s29_s19 = sadd.s32 1, %s743_s16  ;;  %s747_s17 = sphi %s784_s17, %s20_s17   ;;  %s743_s16 = sphi %s782_s16, %s939_s16   ;;  %s739_s15 = sphi %s780_s15, %s938_s15   ;;  %s735_s14 = sphi %s778_s14, %s937_s14   ;;  %s731_s13 = sphi %s776_s13, %s936_s13   ;;  %s727_s12 = sphi %s774_s12, %s935_s12  }
   0x8   : > { %p30_p0 = scmp.ge.s32.totalorder %s29_s19, 3  ;;  %p38_p1 = scmp.lt.s32.totalorder %s743_s16, 2 }
   0x9   : > { %s47_s20 = sadd.s32 1, %s735_s14  ;;  %p54_p2 = scmp.ne.s32.totalorder %s735_s14, %s731_s13 }
   0xa   : > { %s941_s19 = smov (%p30_p0, %s29_s19), 0  ;;  %p55_p4 = scmp.eq.s32.totalorder %s747_s17, 0 }
   0xb   : > { %s39_s21 = scalar_select %p38_p1, %s743_s16, 2 }
   0xc   : > { %p42_p3 = scmp.lt.s32.totalorder %s941_s19, 2  ;;  %p60_p5 = scmp.ne.s32.totalorder %s731_s13, %s727_s12 }
   0xd   : > { %p61_p6 = scmp.eq.s32.totalorder %s803_s18, 0  ;;  %p56_p7 = por %p55_p4, %p54_p2 }
   0xe   : > { %s43_s22 = scalar_select %p42_p3, %s941_s19, 2 }
   0xf   : > { %p818_p8 = por %p61_p6, %p60_p5  ;;  %p524_p10 = scmp.lt.s32.totalorder %s747_s17, 3 }
  0x10   : > { %s44_s24 = ssub.s32 %s39_s21, %s43_s22  ;;  %s178_s25 = sand.u32 1, %s735_s14  }
  0x11   : > { %p45_p9 = scmp.eq.s32.totalorder %s44_s24, 0  ;;  %s824_s26 = sshll.u32 %s39_s21, 7 }
  0x12   : > { %s831_s28 = sshll.u32 %s178_s25, 3  ;;  %p833_p11 = pnand %p524_p10, %p56_p7 }
  0x13   : > { %s827_s27 = scalar_select %p45_p9, %s735_s14, %s47_s20  }
  0x14   : > { %s200_s30 = sand.u32 1, %s747_s17   ;;  %s213_s6 = scalar_lea.hbm %s929_s1, %s824_s26 }
  0x15   : > { %s204_s7 = scalar_lea.vmem [#allocation5], %s831_s28  ;;  %p492_p12 = scmp.ge.s32.totalorder %s747_s17, 1 }
  0x16   : > { %s215_s8 = sshll.u32 %s204_s7, 4  ;;  %s844_s9 = scalar_lea.sflag [#allocation6], %s200_s30  ;;  %s216_s8 = int_to_ptr.vmem [resolvable:$true] %s215_s8 }
  0x17   : > { %p583_p13 = pneg %p833_p11  ;;  %s594_s10 = scalar_lea.vmem %s216_s8, 128 }
  0x18   : > { %p595_p0 = scmp.ne.s32.totalorder %s216_s8, %s594_s10  ;;  %s749_s11 = smov [#allocation5]  }
  0x19   : > { %s599_s12 = sshll.u32 %s749_s11, 4  ;;  %s600_s12 = int_to_ptr.vmem [resolvable:$false] %s599_s12 }
  0x1a   : > { %p597_p1 = pnand %p595_p0, %p583_p13  ;;  %s601_s20 = scalar_lea.vmem %s600_s12, 256 }
  0x1b   : > { %p602_p3 = scmp.lt.s32.totalorder %s216_s8, %s600_s12  ;;  %p603_p4 = scmp.lt.s32.totalorder %s601_s20, %s594_s10 }
  0x1c   : > { %p598_p2 = pneg %p597_p1 }
  0x1d   : > { %p604_p5 = por %p603_p4, %p602_p3 }
  0x1f   : > { %p605_p6 = pnand %p604_p5, %p598_p2 }
  0x21   : > { %608 = shalt.err (!%p605_p6)
}
  0x22   : > { %520 = dma.hbm_to_vmem [thread:$0]  (!%p833_p11), %s213_s6, 128, %s216_s8, %s844_s9  }
  0x23   : > { %p242_p7 = scmp.lt.s32.totalorder %s747_s17, 4  ;;  %s191_s30 = scalar_lea.hbm %s928_s0, %s824_s26 }
  0x24   : > { %s182_s4 = scalar_lea.vmem [#allocation2], %s831_s28  ;;  %s179_s7 = scalar_lea.sflag [#allocation3], %s178_s25 }
  0x25   : > { %p857_p9 = pnand %p492_p12, %p242_p7  ;;  %s193_s5 = sshll.u32 %s182_s4, 4  ;;  %s194_s5 = int_to_ptr.vmem [resolvable:$true] %s193_s5 }
  0x26   : > { %s622_s10 = scalar_lea.vmem %s194_s5, 128  ;;  %s750_s6 = smov [#allocation2]  }
  0x27   : > { %p623_p10 = scmp.ne.s32.totalorder %s194_s5, %s622_s10  ;;  %s627_s8 = sshll.u32 %s750_s6, 4  ;;  %s628_s8 = int_to_ptr.vmem [resolvable:$false] %s627_s8 }
  0x28   : > { %s629_s11 = scalar_lea.vmem %s628_s8, 256  ;;  %p630_p12 = scmp.lt.s32.totalorder %s194_s5, %s628_s8 }
  0x29   : > { %p625_p0 = pnand %p623_p10, %p583_p13  ;;  %p631_p2 = scmp.lt.s32.totalorder %s629_s11, %s622_s10 }
  0x2b   : > { %p626_p1 = pneg %p625_p0  ;;  %p632_p3 = por %p631_p2, %p630_p12 }
  0x2d   : > { %p633_p4 = pnand %p632_p3, %p626_p1 }
  0x2f   : > { %636 = shalt.err (!%p633_p4)
}
  0x30   : > { %517 = dma.hbm_to_vmem [thread:$0]  (!%p833_p11), %s191_s30, 128, %s194_s5, %s179_s7  }
  0x31   : > { %s235_s20 = scalar_lea.hbm %s930_s2, %s824_s26  ;;  %s226_s22 = scalar_lea.vmem [#allocation7], %s831_s28 }
  0x32   : > { %s237_s24 = sshll.u32 %s226_s22, 4  ;;  %s751_s10 = smov [#allocation7]   ;;  %s238_s24 = int_to_ptr.vmem [resolvable:$true] %s237_s24 }
  0x33   : > { %s650_s4 = scalar_lea.vmem %s238_s24, 128  ;;  %s655_s6 = sshll.u32 %s751_s10, 4  ;;  %s656_s6 = int_to_ptr.vmem [resolvable:$false] %s655_s6 }
  0x34   : > { %p651_p5 = scmp.ne.s32.totalorder %s238_s24, %s650_s4  ;;  %s657_s8 = scalar_lea.vmem %s656_s6, 256 }
  0x35   : > { %p658_p10 = scmp.lt.s32.totalorder %s238_s24, %s656_s6  ;;  %p659_p0 = scmp.lt.s32.totalorder %s657_s8, %s650_s4 }
  0x36   : > { %p653_p6 = pnand %p651_p5, %p583_p13 }
  0x37   : > { %p660_p1 = por %p659_p0, %p658_p10 }
  0x38   : > { %p654_p7 = pneg %p653_p6 }
  0x3a   : > { %p661_p12 = pnand %p660_p1, %p654_p7 }
  0x3c   : > { %664 = shalt.err (!%p661_p12)
}
  0x3d   : > { %523 = dma.hbm_to_vmem [thread:$0]  (!%p833_p11), %s235_s20, 128, %s238_s24, %s844_s9  }
  0x3e   : > { %246 = sbr.rel (%p857_p9) target bundleno = 462 (0x1ce), region = 32  ;;  %s248_s26 = sand.u32 (!%p857_p9), 1, %s731_s13  }
  0x3f   : > { %s493_s28 = sshll.u32 (!%p857_p9), %s248_s26, 3  ;;  %s249_s30 = scalar_lea.sflag (!%p857_p9), [#allocation3], %s248_s26 }
  0x40   : > { %s252_s5 = scalar_lea.vmem (!%p857_p9), [#allocation2], %s493_s28 }
  0x43   : > { %714 = dma.done.wait (%p818_p8), %s249_s30, 128  }
  0x44   : > { %716 = vsyncadd (%p818_p8), %s249_s30, 4294967168  ;;  %s257_s7 = sand.u32 1, %s803_s18   ;;  %s261_s11 = scalar_lea.vmem [#allocation5], %s493_s28 }
  0x45   : > { %s258_s29 = scalar_lea.sflag [#allocation6], %s257_s7 }
  0x46   : > { %718 = dma.done.wait (%p818_p8), %s258_s29, 256  }
  0x47   : > { %720 = vsyncadd (%p818_p8), %s258_s29, 4294967040  ;;  %s270_s9 = scalar_lea.vmem [#allocation7], %s493_s28  ;;  %p496_p11 = scmp.ne.s32.totalorder %s739_s15, 0 }
  0x49   : > { %313 = sbr.rel (%p496_p11) target bundleno = 80 (0x50), region = 48 }
  0x4e   : > { %v752_v0 = vmov 0.0  }
  0x4f   : > { %314 = vst [vmem:[#allocation8] sm:$0xff] %v752_v0 }
  0x50 PF: > { %v315_v1 = vld [vmem:[%s252_s5] sm:$0xff]  ;;  %v316_v2 = vld [vmem:[%s261_s11] sm:$0xff]  ;;  %vm321_vm0 = vcmask 261120   ;;  %v349_v13 = vlaneseq  ;;  %s497_s23 = sshll.u32 %s739_s15, 3  ;;  %vm356_vm6 = vcmask 7168   ;;  %s753_s15 = smov [#allocation8]  }
  0x51   : > { %v317_v3 = vld [vmem:[%s270_s9] sm:$0xff]  ;;  %v318_v4 = vsub.f32 %v315_v1, %v316_v2  ;;  %v351_v19 = vstv %s497_s23  ;;  %s379_s21 = sshll.u32 %s753_s15, 4  ;;  %p525_p8 = scmp.eq.s32.totalorder %s803_s18, 2  ;;  %s380_s21 = int_to_ptr.vmem [resolvable:$true] %s379_s21 }
  0x52   : > { %v319_v5 = vsub.f32 %v315_v1, %v317_v3  ;;  %v350_v16 = vshrl.u32 %v349_v13, 7  ;;  %s665_s12 = scalar_lea.vmem %s380_s21, 128  ;;  %p672_p3 = scmp.lt.s32.totalorder %s380_s21, %s380_s21 }
  0x53   : > { %v320_v6 = vmul.f32 %v318_v4, %v318_v4  ;;  %p666_p13 = scmp.ne.s32.totalorder %s380_s21, %s665_s12  ;;  %p673_p4 = scmp.lt.s32.totalorder %s665_s12, %s665_s12 }
  0x54   : > { %v332_v7 = vmul.f32 %v319_v5, %v319_v5  ;;  %v352_v25 = vadd.s32 %v351_v19, %v350_v16 }
  0x55   : > { %v322_v8 = vsel %vm321_vm0, %v320_v6, 0.0  ;;  %p667_p9 = pnand %p666_p13, %p525_p8  ;;  %p674_p5 = por %p673_p4, %p672_p3 }
  0x56   : > { %323 = vadd.xlane.f32.xlu0 %v322_v8  ;;  %v333_v9 = vsel %vm321_vm0, %v332_v7, 0.0  ;;  %vm353_vm5 = vcmp.lt.s32.totalorder %v352_v25, 20  ;;  %v355_v38 = vld [vmem:[#allocation8] sm:$0xff] }
  0x57   : > { %p668_p2 = pneg %p667_p9 }
  0x59   : > { %p675_p6 = pnand %p674_p5, %p668_p2 }
  0x5a   : > { %334 = vadd.xlane.f32.xlu0 %v333_v9 }
  0xdf   : > { %v324_v10 = vpop.xlane.xlu0 %323 }
  0xe0   : > { %577 = vrsqrt.f32 %v324_v10  ;;  %vm327_vm1 = vcmp.eq.f32.partialorder %v324_v10, inf  ;;  %v330_v21 = vand.u32 2147483648, %v324_v10  ;;  %vm329_vm3 = vcmp.eq.f32.partialorder %v324_v10, 0.0 }
  0xe3   : > { %v335_v11 = vpop.xlane.xlu0 %334 }
  0xe4   : > { %579 = vrsqrt.f32 %v335_v11  ;;  %vm338_vm2 = vcmp.eq.f32.partialorder %v335_v11, inf  ;;  %v341_v20 = vand.u32 2147483648, %v335_v11  ;;  %vm340_vm4 = vcmp.eq.f32.partialorder %v335_v11, 0.0 }
  0xed   : > { %v578_v12 = vpop.eup %577 }
  0xee   : > { %v326_v14 = vmul.f32 %v578_v12, %v324_v10 }
  0xf0   : > { %v328_v18 = vsel %vm327_vm1, %v324_v10, %v326_v14 }
  0xf1   : > { %v580_v15 = vpop.eup %579  ;;  %v331_v23 = vsel %vm329_vm3, %v330_v21, %v328_v18 }
  0xf2   : > { %v337_v17 = vmul.f32 %v580_v15, %v335_v11 }
  0xf4   : > { %v339_v22 = vsel %vm338_vm2, %v335_v11, %v337_v17 }
  0xf5   : > { %v342_v24 = vsel %vm340_vm4, %v341_v20, %v339_v22 }
  0xf6   : > { %v343_v26 = vsub.f32 %v331_v23, %v342_v24 }
  0xf8   : > { %v344_v27 = vadd.f32 1.0, %v343_v26 }
  0xfa   : > { %v345_v28 = vmax.f32 %v344_v27, 0.0 }
  0xfc   : > { %v354_v29 = vsel %vm353_vm5, %v345_v28, 0.0 }
  0xfd   : > { %v357_v30 = vsel %vm356_vm6, %v354_v29, 0.0 }
  0xfe   : > { %358 = vadd.xlane.f32.xlu1 %v357_v30 }
 0x187   : > { %v359_v31 = vpop.xlane.xlu1 %358 }
 0x188   : > { %v360_v32 = vrot.slane %v359_v31, 4 }
 0x18a   : > { %v361_v33 = vadd.f32 %v360_v32, %v359_v31 }
 0x18c   : > { %v362_v34 = vrot.slane %v361_v33, 2 }
 0x18e   : > { %v363_v35 = vadd.f32 %v362_v34, %v361_v33 }
 0x190   : > { %v364_v36 = vrot.slane %v363_v35, 1 }
 0x192   : > { %v365_v37 = vadd.f32 %v364_v36, %v363_v35 }
 0x194   : > { %502 = vpush %v365_v37 }
 0x1c5   : > { %s503_s25 = spop %502 }
 0x1c6   : > { %v367_v39 = vstv %s503_s25 }
 0x1c7   : > { %v368_v40 = vadd.f32 %v367_v39, %v355_v38 }
 0x1c9   : > { %369 = vst [vmem:[#allocation8] sm:$0xff] %v368_v40 }
 0x1ca   : > { %678 = shalt.err (!%p675_p6)
}
 0x1cb   : > { %511 = dma.vmem_to_hbm [thread:$0]  (%p525_p8), %s380_s21, 128, %s931_s3, [#allocation4]  }
 0x1cc   : > { %722 = dma.done.wait (%p525_p8), [#allocation4], 128  }
 0x1cd   : > { %724 = vsyncadd (%p525_p8), [#allocation4], 4294967168 }
 0x1ce PF: > { %s20_s17 = sadd.s32 1, %s747_s17   ;;  %s935_s12 = smov %s731_s13 }
 0x1cf   : > { %p17_p7 = scmp.ge.s32.totalorder %s20_s17, 5   ;;  %s936_s13 = smov %s735_s14 }
 0x1d0   : > { %s937_s14 = smov %s827_s27  ;;  %s938_s15 = smov %s743_s16 }
 0x1d1   : > { %s939_s16 = smov %s941_s19  ;;  %19 = sbr.rel (!%p17_p7) target bundleno = 7 (0x7), region = 98 }
 0x1d6   :  { %392 = vsyncpa [#allocation3], 1 }
 0x1d7   :  { %394 = vsyncpa [#allocation3 + $0x1], 1 }
 0x1d8   :  { %395 = vsyncpa [#allocation6], 1 }
 0x1d9   :  { %397 = vsyncpa [#allocation6 + $0x1], 1 }
 0x1da   :  { %398 = vsyncpa [#allocation4], 1 }
 0x1db   :  { %400 = vsyncpa [#allocation4 + $0x1], 1 }

</bundles_post_ra>
